<compile_context>
chip_gen: v6e
topology: v6e:2x2x1
jax: 0.10.0
libtpu: 0.0.40
codegen_flags: <defaults>
</compile_context>

<pallas_src>
import functools

import jax
import jax.numpy as jnp
from jax import lax
from jax.experimental import pallas as pl
from jax.experimental.pallas import tpu as pltpu

HIDDEN = 256
HEAD_PAD = 128  # lane-dense fused-head width (mu | log_std | zero padding)


def _round_up(x, m):
    return ((x + m - 1) // m) * m


def _cdiv(a, b):
    return -(-a // b)


def _plan_tiles(batch, max_tile_b, min_tiles):
    """Pick (tile_b, num_tiles, padded_batch) with minimal padding."""
    b8 = _round_up(max(batch, 1), 8)
    num_tiles = max(_cdiv(b8, max_tile_b), min_tiles)
    num_tiles = max(min(num_tiles, b8 // 8), 1)   # no tile made purely of padding
    tile_b = _round_up(_cdiv(b8, num_tiles), 8)
    return tile_b, num_tiles, num_tiles * tile_b


def _default_min_tiles():
    """>=2 grid steps on v7x (2 TCs/chip) so 'parallel' sharding has work."""
    try:
        kind = jax.devices()[0].device_kind.lower()
    except Exception:
        return 1
    return 2 if "7" in kind else 1


def actor_kernel(s_ref, w1_ref, w2_ref, wh_ref, bias_ref, out_ref, *, action_dim):
    """One batch tile of Actor.forward.

    out[:, 0:A)   = mu-head result (raw)
    out[:, A:2A)  = exp(clip(log_std-head result, -20, 2))
    out[:, 2A:)   = padding (never consumed)
    """
    x = s_ref[...].astype(jnp.bfloat16)

    b1 = bias_ref[:, 0:HIDDEN]
    b2 = bias_ref[:, HIDDEN:2 * HIDDEN]
    bh = bias_ref[:, 2 * HIDDEN:2 * HIDDEN + HEAD_PAD]

    # hidden layer 1: Linear(state_dim, 256) + ReLU   (bf16 matmul, f32 acc)
    h1 = jnp.dot(x, w1_ref[...], preferred_element_type=jnp.float32) + b1
    h1 = jnp.maximum(h1, 0.0)

    # hidden layer 2: Linear(256, 256) + ReLU
    h2 = jnp.dot(h1.astype(jnp.bfloat16), w2_ref[...],
                 preferred_element_type=jnp.float32) + b2
    h2 = jnp.maximum(h2, 0.0)

    # fused heads: one Linear(256, 128) covering mu (cols <A) and log_std (cols A..2A)
    head = jnp.dot(h2.astype(jnp.bfloat16), wh_ref[...],
                   preferred_element_type=jnp.float32) + bh

    # std branch: clamp(-20, 2) then exp (EUP slot); per-lane select keeps the
    # single unmasked full-width store.
    std = jnp.exp(jnp.clip(head, -20.0, 2.0))
    col = lax.broadcasted_iota(jnp.int32, head.shape, 1)
    out_ref[...] = jnp.where(col < action_dim, head, std)


def pack_actor_params(params):
    """Fuse heads adjacently, merge biases into one slab, cast weights to bf16.

    Accepts biases shaped either (out,) (PyTorch-style) or (1, out).
    """
    w1, b1, w2, b2, wmu, bmu, wls, bls = params
    action_dim = wmu.shape[1]
    assert 2 * action_dim <= HEAD_PAD, "need 2*action_dim <= 128 for this packing"

    def vec(b, n):
        b = jnp.asarray(b, jnp.float32).reshape(-1)
        assert b.shape[0] == n, f"bias has {b.shape[0]} entries, expected {n}"
        return b

    wh = jnp.zeros((HIDDEN, HEAD_PAD), jnp.float32)
    wh = wh.at[:, :action_dim].set(wmu)
    wh = wh.at[:, action_dim:2 * action_dim].set(wls)

    bh = jnp.zeros((HEAD_PAD,), jnp.float32)
    bh = bh.at[:action_dim].set(vec(bmu, action_dim))
    bh = bh.at[action_dim:2 * action_dim].set(vec(bls, action_dim))

    bias_slab = jnp.concatenate(
        [vec(b1, HIDDEN), vec(b2, HIDDEN), bh]).reshape(1, 2 * HIDDEN + HEAD_PAD)

    return (w1.astype(jnp.bfloat16),
            w2.astype(jnp.bfloat16),
            wh.astype(jnp.bfloat16),
            bias_slab)


@functools.partial(jax.jit, static_argnames=("action_dim", "max_tile_b", "min_tiles"))
def actor_forward(state, packed, action_dim, max_tile_b=2048, min_tiles=1):
    """Pallas implementation of Actor.forward: returns (mu, std)."""
    w1, w2, wh, bias = packed
    B, S = state.shape

    tile_b, num_tiles, Bp = _plan_tiles(B, max_tile_b, min_tiles)
    if Bp != B:
        state = jnp.pad(state, ((0, Bp - B), (0, 0)))

    rows = lambda i: (i, 0)      # state/output: tiled on rows
    const = lambda i: (0, 0)     # weights/biases: same block every grid step

    def weight_spec(shape):
        return pl.BlockSpec(shape, const, pipeline_mode=pl.Buffered(1))

    # Cost estimate based on the REAL batch, not the padded one.
    flops = 2 * B * (S * HIDDEN + HIDDEN * HIDDEN + HIDDEN * HEAD_PAD)
    bytes_accessed = (B * S * 4 + w1.size * 2 + w2.size * 2 + wh.size * 2 +
                      bias.size * 4 + B * HEAD_PAD * 4)

    out = pl.pallas_call(
        functools.partial(actor_kernel, action_dim=action_dim),
        out_shape=jax.ShapeDtypeStruct((Bp, HEAD_PAD), jnp.float32),
        grid=(num_tiles,),
        in_specs=[
            pl.BlockSpec((tile_b, S), rows),
            weight_spec(w1.shape),
            weight_spec(w2.shape),
            weight_spec(wh.shape),
            weight_spec(bias.shape),
        ],
        out_specs=pl.BlockSpec((tile_b, HEAD_PAD), rows),
        compiler_params=pltpu.CompilerParams(
            dimension_semantics=("parallel",)),
        cost_estimate=pl.CostEstimate(
            flops=int(flops),
            transcendentals=int(B * HEAD_PAD),
            bytes_accessed=int(bytes_accessed)),
    )(state, w1, w2, wh, bias)

    # One contiguous narrow slice, then a cheap split of the tiny result.
    slab = out[:B, :2 * action_dim]
    mu = slab[:, :action_dim]
    std = slab[:, action_dim:]
    return mu, std


def init_params(key, state_dim, action_dim, hidden=HIDDEN):
    """Deterministic synthetic parameter init (PyTorch-style uniform ranges)."""
    ks = jax.random.split(key, 8)

    def lin(kw, kb, fan_in, fan_out):
        bound = 1.0 / jnp.sqrt(jnp.float32(fan_in))
        w = jax.random.uniform(kw, (fan_in, fan_out), jnp.float32, -bound, bound)
        b = jax.random.uniform(kb, (fan_out,), jnp.float32, -bound, bound)
        return w, b

    w1, b1 = lin(ks[0], ks[1], state_dim, hidden)
    w2, b2 = lin(ks[2], ks[3], hidden, hidden)
    wmu, bmu = lin(ks[4], ks[5], hidden, action_dim)
    wls, bls = lin(ks[6], ks[7], hidden, action_dim)
    return (w1, b1, w2, b2, wmu, bmu, wls, bls)


def actor_forward_ref(state, params):
    """Pure-JAX reference with matched bf16-input / f32-accumulate numerics."""
    w1, b1, w2, b2, wmu, bmu, wls, bls = params

    def mm(a, w):
        return jnp.dot(a.astype(jnp.bfloat16), w.astype(jnp.bfloat16),
                       preferred_element_type=jnp.float32)

    h1 = jnp.maximum(mm(state, w1) + b1, 0.0)
    h2 = jnp.maximum(mm(h1, w2) + b2, 0.0)
    mu = mm(h2, wmu) + bmu
    std = jnp.exp(jnp.clip(mm(h2, wls) + bls, -20.0, 2.0))
    return mu, std


# TODO(synk): Actor.sample (rsample + tanh squash + log_prob) is stochastic
# host-side logic and is intentionally not implemented in the kernel.

if __name__ == "__main__":
    key = jax.random.PRNGKey(0)
    k_params, k_state, k_state2 = jax.random.split(key, 3)

    batch = 2
    state_dim = 8
    action_dim = 4
    # max_action only scales sampled actions (Actor.sample); forward() ignores it.

    min_tiles = _default_min_tiles()   # 2 on v7x (megacore), 1 on v5e/v6e

    params = init_params(k_params, state_dim, action_dim)
    packed = pack_actor_params(params)

    # --- small-batch check (B=2) ---
    state = jax.random.normal(k_state, (batch, state_dim), jnp.float32)
    mu, std = actor_forward(state, packed, action_dim=action_dim,
                            min_tiles=min_tiles)
    jax.block_until_ready((mu, std))

    mu_ref, std_ref = actor_forward_ref(state, params)
    assert mu.shape == (batch, action_dim) and std.shape == (batch, action_dim)
    assert jnp.allclose(mu, mu_ref, atol=1e-3, rtol=1e-3)
    assert jnp.allclose(std, std_ref, atol=1e-3, rtol=1e-3)
    assert bool(jnp.all(std > 0))

    # --- larger-batch check (exercises row padding + the new tiling policy) ---
    batch2 = 600
    state2 = jax.random.normal(k_state2, (batch2, state_dim), jnp.float32)
    mu2, std2 = actor_forward(state2, packed, action_dim=action_dim,
                              min_tiles=min_tiles)
    jax.block_until_ready((mu2, std2))

    mu2_ref, std2_ref = actor_forward_ref(state2, params)
    assert mu2.shape == (batch2, action_dim) and std2.shape == (batch2, action_dim)
    assert jnp.allclose(mu2, mu2_ref, atol=1e-3, rtol=1e-3)
    assert jnp.allclose(std2, std2_ref, atol=1e-3, rtol=1e-3)
    assert bool(jnp.all(std2 > 0))

    print("KERNEL_OK")
</pallas_src>

<mosaic_0001>
module attributes {stable_mosaic.version = 11 : i64} {
  func.func @actor_kernel(%arg0: i32, %arg1: memref<8x8xf32, #tpu.memory_space<vmem>>, %arg2: memref<8x256xbf16, #tpu.memory_space<vmem>>, %arg3: memref<256x256xbf16, #tpu.memory_space<vmem>>, %arg4: memref<256x128xbf16, #tpu.memory_space<vmem>>, %arg5: memref<1x640xf32, #tpu.memory_space<vmem>>, %arg6: memref<8x128xf32, #tpu.memory_space<vmem>>) attributes {dimension_semantics = [#tpu.dimension_semantics<parallel>], iteration_bounds = array<i64: 1>, scalar_prefetch = 0 : i64, scratch_operands = 0 : i64, tpu.core_type = #tpu.core_type<tc>, window_params = [{transform_indices = @transform_0, window_bounds = array<i64: 8, 8>}, {pipeline_mode = #tpu.pipeline_mode<synchronous>, transform_indices = @transform_1, window_bounds = array<i64: 8, 256>}, {pipeline_mode = #tpu.pipeline_mode<synchronous>, transform_indices = @transform_2, window_bounds = array<i64: 256, 256>}, {pipeline_mode = #tpu.pipeline_mode<synchronous>, transform_indices = @transform_3, window_bounds = array<i64: 256, 128>}, {pipeline_mode = #tpu.pipeline_mode<synchronous>, transform_indices = @transform_4, window_bounds = array<i64: 1, 640>}, {transform_indices = @transform_5, window_bounds = array<i64: 8, 128>}]} {
    %c0 = arith.constant 0 : index
    %c0_0 = arith.constant 0 : index
    %0 = vector.load %arg1[%c0, %c0_0] : memref<8x8xf32, #tpu.memory_space<vmem>>, vector<8x8xf32>
    %1 = arith.truncf %0 : vector<8x8xf32> to vector<8x8xbf16>
    %c0_1 = arith.constant 0 : index
    %c0_2 = arith.constant 0 : index
    %2 = vector.load %arg5[%c0_1, %c0_2] : memref<1x640xf32, #tpu.memory_space<vmem>>, vector<1x256xf32>
    %c0_3 = arith.constant 0 : index
    %c256 = arith.constant 256 : index
    %3 = vector.load %arg5[%c0_3, %c256] : memref<1x640xf32, #tpu.memory_space<vmem>>, vector<1x256xf32>
    %c0_4 = arith.constant 0 : index
    %c512 = arith.constant 512 : index
    %4 = vector.load %arg5[%c0_4, %c512] : memref<1x640xf32, #tpu.memory_space<vmem>>, vector<1x128xf32>
    %c0_5 = arith.constant 0 : index
    %c0_6 = arith.constant 0 : index
    %5 = vector.load %arg2[%c0_5, %c0_6] : memref<8x256xbf16, #tpu.memory_space<vmem>>, vector<8x256xbf16>
    %cst = arith.constant dense<0.000000e+00> : vector<8x256xf32>
    %6 = tpu.matmul %1, %5, %cst {dimension_numbers = #tpu.dot_dimension_numbers<[1], [0], [0], [1], [0, 0, 1, 1], [], []>} : vector<8x8xbf16>, vector<8x256xbf16>, vector<8x256xf32> -> vector<8x256xf32>
    %7 = vector.broadcast %2 : vector<1x256xf32> to vector<8x256xf32>
    %8 = arith.addf %6, %7 : vector<8x256xf32>
    %cst_7 = arith.constant 0.000000e+00 : f32
    %9 = vector.broadcast %cst_7 : f32 to vector<8x256xf32>
    %10 = arith.maximumf %8, %9 : vector<8x256xf32>
    %11 = arith.truncf %10 : vector<8x256xf32> to vector<8x256xbf16>
    %c0_8 = arith.constant 0 : index
    %c0_9 = arith.constant 0 : index
    %12 = vector.load %arg3[%c0_8, %c0_9] : memref<256x256xbf16, #tpu.memory_space<vmem>>, vector<256x256xbf16>
    %cst_10 = arith.constant dense<0.000000e+00> : vector<8x256xf32>
    %13 = tpu.matmul %11, %12, %cst_10 {dimension_numbers = #tpu.dot_dimension_numbers<[1], [0], [0], [1], [0, 0, 1, 1], [], []>} : vector<8x256xbf16>, vector<256x256xbf16>, vector<8x256xf32> -> vector<8x256xf32>
    %14 = vector.broadcast %3 : vector<1x256xf32> to vector<8x256xf32>
    %15 = arith.addf %13, %14 : vector<8x256xf32>
    %cst_11 = arith.constant 0.000000e+00 : f32
    %16 = vector.broadcast %cst_11 : f32 to vector<8x256xf32>
    %17 = arith.maximumf %15, %16 : vector<8x256xf32>
    %18 = arith.truncf %17 : vector<8x256xf32> to vector<8x256xbf16>
    %c0_12 = arith.constant 0 : index
    %c0_13 = arith.constant 0 : index
    %19 = vector.load %arg4[%c0_12, %c0_13] : memref<256x128xbf16, #tpu.memory_space<vmem>>, vector<256x128xbf16>
    %cst_14 = arith.constant dense<0.000000e+00> : vector<8x128xf32>
    %20 = tpu.matmul %18, %19, %cst_14 {dimension_numbers = #tpu.dot_dimension_numbers<[1], [0], [0], [1], [0, 0, 1, 1], [], []>} : vector<8x256xbf16>, vector<256x128xbf16>, vector<8x128xf32> -> vector<8x128xf32>
    %21 = vector.broadcast %4 : vector<1x128xf32> to vector<8x128xf32>
    %22 = arith.addf %20, %21 : vector<8x128xf32>
    %cst_15 = arith.constant -2.000000e+01 : f32
    %cst_16 = arith.constant 2.000000e+00 : f32
    %23 = vector.broadcast %cst_15 : f32 to vector<8x128xf32>
    %24 = arith.maximumf %23, %22 : vector<8x128xf32>
    %25 = vector.broadcast %cst_16 : f32 to vector<8x128xf32>
    %26 = arith.minimumf %25, %24 : vector<8x128xf32>
    %27 = math.exp %26 : vector<8x128xf32>
    %28 = tpu.iota {dimensions = array<i32: 1>} : vector<8x128xi32>
    %c4_i32 = arith.constant 4 : i32
    %29 = vector.broadcast %c4_i32 : i32 to vector<8x128xi32>
    %30 = arith.cmpi slt, %28, %29 : vector<8x128xi32>
    %31 = arith.select %30, %22, %27 : vector<8x128xi1>, vector<8x128xf32>
    %c0_17 = arith.constant 0 : index
    %c0_18 = arith.constant 0 : index
    %32 = vector.load %arg6[%c0_17, %c0_18] : memref<8x128xf32, #tpu.memory_space<vmem>>, vector<8x128xf32>
    tpu.vector_store %arg6[%c0_17, %c0_18], %31 {strides = array<i32>} : memref<8x128xf32, #tpu.memory_space<vmem>>, vector<8x128xf32>,
    return
  }
  func.func @transform_0(%arg0: i32) -> (i32, i32) {
    %c0_i32 = arith.constant 0 : i32
    %c0_i32_0 = arith.constant 0 : i32
    return %arg0, %c0_i32 : i32, i32
  }
  func.func @transform_1(%arg0: i32) -> (i32, i32) {
    %c0_i32 = arith.constant 0 : i32
    %c0_i32_0 = arith.constant 0 : i32
    %c0_i32_1 = arith.constant 0 : i32
    return %c0_i32, %c0_i32_0 : i32, i32
  }
  func.func @transform_2(%arg0: i32) -> (i32, i32) {
    %c0_i32 = arith.constant 0 : i32
    %c0_i32_0 = arith.constant 0 : i32
    %c0_i32_1 = arith.constant 0 : i32
    return %c0_i32, %c0_i32_0 : i32, i32
  }
  func.func @transform_3(%arg0: i32) -> (i32, i32) {
    %c0_i32 = arith.constant 0 : i32
    %c0_i32_0 = arith.constant 0 : i32
    %c0_i32_1 = arith.constant 0 : i32
    return %c0_i32, %c0_i32_0 : i32, i32
  }
  func.func @transform_4(%arg0: i32) -> (i32, i32) {
    %c0_i32 = arith.constant 0 : i32
    %c0_i32_0 = arith.constant 0 : i32
    %c0_i32_1 = arith.constant 0 : i32
    return %c0_i32, %c0_i32_0 : i32, i32
  }
  func.func @transform_5(%arg0: i32) -> (i32, i32) {
    %c0_i32 = arith.constant 0 : i32
    %c0_i32_0 = arith.constant 0 : i32
    return %arg0, %c0_i32 : i32, i32
  }
}

</mosaic_0001>

<bundles_post_ra>
// kernel: actor_forward.1
= control target key start
LH: loop header
LB: loop body
LE: loop exit
PB: predicated region body
PF: predicated region fallthrough
CT: control target
= control target key end

     0   :  { %10 = vsyncpa [#allocation3], 0  ;;  %s819_s0 = inlined_call_operand.vmem [shape: f32[8,8], index: 0, kind: input, shape index: {}]   ;;  %s820_s1 = inlined_call_operand.vmem [shape: bf16[8,256], index: 1, kind: input, shape index: {}]   ;;  %s821_s2 = inlined_call_operand.hbm [shape: bf16[256,256], index: 2, kind: input, shape index: {}]   ;;  %s822_s3 = inlined_call_operand.hbm [shape: bf16[256,128], index: 3, kind: input, shape index: {}]   ;;  %s823_s4 = inlined_call_operand.vmem [shape: f32[1,640], index: 4, kind: input, shape index: {}]   ;;  %s824_s5 = inlined_call_operand.vmem [shape: f32[8,128], index: 5, kind: output, shape index: {}]  }
   0x1   :  { %11 = vsyncpa [#allocation5], 0  ;;  %s758_s18 = smov [#allocation2]  }
   0x2   :  { %s21_s19 = sshll.u32 %s758_s18, 4  ;;  %s22_s19 = int_to_ptr.vmem [resolvable:$true] %s21_s19 }
   0x3   :  { %s722_s20 = scalar_lea.vmem %s22_s19, 4096  ;;  %p727_p1 = scmp.lt.s32.totalorder %s22_s19, %s22_s19 }
   0x4   :  { %p723_p0 = scmp.ne.s32.totalorder %s22_s19, %s722_s20  ;;  %p728_p2 = scmp.lt.s32.totalorder %s722_s20, %s722_s20 }
   0x6   :  { %p729_p3 = por %p728_p2, %p727_p1 }
   0x8   :  { %p730_p4 = pnand %p729_p3, %p723_p0 }
   0xa   :  { %733 = shalt.err (!%p730_p4)
}
   0xb   :  { %s759_s21 = smov 128   ;;  %s760_s22 = smov 8  }
   0xc   :  { %27 = dma.hbm_to_vmem [thread:$0]  %s821_s2, 4096, %s22_s19, [#allocation3], %s759_s21, %s759_s21, %s760_s22  }
   0xd   :  { %s761_s25 = smov [#allocation4]  }
   0xe   :  { %s33_s26 = sshll.u32 %s761_s25, 4  ;;  %s34_s26 = int_to_ptr.vmem [resolvable:$true] %s33_s26 }
   0xf   :  { %s742_s27 = scalar_lea.vmem %s34_s26, 2048  ;;  %p747_p6 = scmp.lt.s32.totalorder %s34_s26, %s34_s26 }
  0x10   :  { %p743_p5 = scmp.ne.s32.totalorder %s34_s26, %s742_s27  ;;  %p748_p7 = scmp.lt.s32.totalorder %s742_s27, %s742_s27 }
  0x12   :  { %p749_p8 = por %p748_p7, %p747_p6 }
  0x14   :  { %p750_p9 = pnand %p749_p8, %p743_p5 }
  0x16   :  { %753 = shalt.err (!%p750_p9)
}
  0x17   :  { %s762_s28 = smov 64   ;;  %s763_s29 = smov 4  }
  0x18   :  { %39 = dma.hbm_to_vmem [thread:$0]  %s822_s3, 2048, %s34_s26, [#allocation5], %s762_s28, %s762_s28, %s763_s29  }
  0x19   :  { %754 = dma.done.wait [#allocation3], 4096  }
  0x1a   :  { %755 = vsyncadd [#allocation3], 4294963200 }
  0x1b   :  { %756 = dma.done.wait [#allocation5], 2048  }
  0x1c   :  { %757 = vsyncadd [#allocation5], 4294965248  ;;  %v764_v0 = vmov 0   ;;  %v54_v1 = vld [vmem:[%s820_s1] sm:$0xff]  ;;  %vm75_vm0 = vcmask 1043456   ;;  %vm71_vm1 = vcmask 64512   ;;  %v56_v51 = vlaneseq }
  0x1d   :  { %114 = vmatprep.mubr.bf16.mxu0 %v764_v0  ;;  %v49_v2 = vld [vmem:[%s819_s0] sm:$0xff]  ;;  %v565_v3 = vcombine.high %v54_v1, %v54_v1  ;;  %v564_v4 = vcombine.low %v54_v1, %v54_v1  ;;  %v648_v5 = vld [vmem:[#allocation2 + $0x74] ss:$8 sps:$4 sm:$0xff]   ;;  %v650_v6 = vld [vmem:[#allocation2 + $0x70] ss:$8 sps:$4 sm:$0xff]  }
  0x1e   :  { %v651_v7 = vld [vmem:[#allocation2 + $0x64] ss:$8 sps:$4 sm:$0xff]   ;;  %v50_v9 = vpack.c.bf16 %v49_v2, %v49_v2  ;;  %330 = vmatprep.subr.bf16.mxu1 %v648_v5  ;;  %v653_v10 = vld [vmem:[#allocation2 + $0x60] ss:$8 sps:$4 sm:$0xff]   ;;  %v654_v11 = vld [vmem:[#allocation2 + $0x54] ss:$8 sps:$4 sm:$0xff]  }
  0x1f   :  { %566 = vmatprep.subr.msk.bf16.mxu0 %vm75_vm0, %v565_v3  ;;  %v77_v8 = vsel %vm75_vm0, %v564_v4, 0  ;;  %331 = vmatpush1.bf16.msra.mxu1 %v650_v6  ;;  %v656_v12 = vld [vmem:[#allocation2 + $0x50] ss:$8 sps:$4 sm:$0xff]   ;;  %v657_v13 = vld [vmem:[#allocation2 + $0x44] ss:$8 sps:$4 sm:$0xff]   ;;  %v57_v52 = vshrl.u32 %v56_v51, 7 }
  0x20   :  { %97 = vmatpush1.bf16.msra.mxu0 %v77_v8  ;;  %332 = vmatprep.subr.bf16.mxu1 %v651_v7  ;;  %v659_v14 = vld [vmem:[#allocation2 + $0x40] ss:$8 sps:$4 sm:$0xff]   ;;  %v660_v15 = vld [vmem:[#allocation2 + $0x34] ss:$8 sps:$4 sm:$0xff]   ;;  %v662_v16 = vld [vmem:[#allocation2 + $0x30] ss:$8 sps:$4 sm:$0xff]  }
  0x21   :  { %v663_v17 = vld [vmem:[#allocation2 + $0x24] ss:$8 sps:$4 sm:$0xff]   ;;  %v665_v18 = vld [vmem:[#allocation2 + $0x20] ss:$8 sps:$4 sm:$0xff]   ;;  %v666_v19 = vld [vmem:[#allocation2 + $0x14] ss:$8 sps:$4 sm:$0xff]  }
  0x22   :  { %v668_v20 = vld [vmem:[#allocation2 + $0x10] ss:$8 sps:$4 sm:$0xff]   ;;  %v669_v21 = vld [vmem:[#allocation2 + $0x4] ss:$8 sps:$4 sm:$0xff]   ;;  %v671_v22 = vld [vmem:[#allocation2] ss:$8 sps:$4 sm:$0xff]  }
  0x23   :  { %567 = vmatmul.mubr.msk.bf16.vlgmr.msra.gmra.mxu0 %vm71_vm1, %v50_v9  ;;  %333 = vmatpush1.bf16.msra.mxu1 %v653_v10  ;;  %v672_v23 = vld [vmem:[#allocation2 + $0xf4] ss:$8 sps:$4 sm:$0xff]   ;;  %v674_v24 = vld [vmem:[#allocation2 + $0xf0] ss:$8 sps:$4 sm:$0xff]   ;;  %v675_v25 = vld [vmem:[#allocation2 + $0xe4] ss:$8 sps:$4 sm:$0xff]  }
  0x24   :  { %334 = vmatprep.subr.bf16.mxu1 %v654_v11  ;;  %v677_v26 = vld [vmem:[#allocation2 + $0xe0] ss:$8 sps:$4 sm:$0xff]   ;;  %v678_v27 = vld [vmem:[#allocation2 + $0xd4] ss:$8 sps:$4 sm:$0xff]   ;;  %v680_v28 = vld [vmem:[#allocation2 + $0xd0] ss:$8 sps:$4 sm:$0xff]  }
  0x25   :  { %v681_v29 = vld [vmem:[#allocation2 + $0xc4] ss:$8 sps:$4 sm:$0xff]   ;;  %v683_v30 = vld [vmem:[#allocation2 + $0xc0] ss:$8 sps:$4 sm:$0xff]   ;;  %v684_v31 = vld [vmem:[#allocation2 + $0xb4] ss:$8 sps:$4 sm:$0xff]  }
  0x26   :  { %v686_v32 = vld [vmem:[#allocation2 + $0xb0] ss:$8 sps:$4 sm:$0xff]   ;;  %v687_v33 = vld [vmem:[#allocation2 + $0xa4] ss:$8 sps:$4 sm:$0xff]   ;;  %v689_v34 = vld [vmem:[#allocation2 + $0xa0] ss:$8 sps:$4 sm:$0xff]  }
  0x27   :  { %335 = vmatpush1.bf16.msra.mxu1 %v656_v12  ;;  %v690_v35 = vld [vmem:[#allocation2 + $0x94] ss:$8 sps:$4 sm:$0xff]   ;;  %v692_v36 = vld [vmem:[#allocation2 + $0x90] ss:$8 sps:$4 sm:$0xff]   ;;  %v693_v37 = vld [vmem:[#allocation2 + $0x84] ss:$8 sps:$4 sm:$0xff]  }
  0x28   :  { %336 = vmatprep.subr.bf16.mxu1 %v657_v13  ;;  %v695_v38 = vld [vmem:[#allocation2 + $0x80] ss:$8 sps:$4 sm:$0xff]   ;;  %v696_v39 = vld [vmem:[#allocation4 + $0x78] sm:$0xff]   ;;  %v698_v41 = vld [vmem:[#allocation4 + $0x70] sm:$0xff]   ;;  %v58_v53 = vsub.s32 0, %v57_v52  ;;  %v62_v55 = vsub.s32 1, %v57_v52 }
  0x29   :  { %v697_v40 = vld [vmem:[#allocation4 + $0x38] sm:$0xff]   ;;  %617 = vmatprep.subr.bf16.mxu0 %v696_v39  ;;  %v699_v42 = vld [vmem:[#allocation4 + $0x30] sm:$0xff]   ;;  %v700_v43 = vld [vmem:[#allocation4 + $0x68] sm:$0xff]  }
  0x2a   :  { %618 = vmatpush3.bf16.msra.mxu0 %v697_v40  ;;  %v701_v44 = vld [vmem:[#allocation4 + $0x28] sm:$0xff]   ;;  %v702_v45 = vld [vmem:[#allocation4 + $0x60] sm:$0xff]   ;;  %v704_v47 = vld [vmem:[#allocation4 + $0x58] sm:$0xff]  }
  0x2b   :  { %337 = vmatpush1.bf16.msra.mxu1 %v659_v14  ;;  %619 = vmatprep.subr.bf16.mxu0 %v698_v41  ;;  %v703_v46 = vld [vmem:[#allocation4 + $0x20] sm:$0xff]   ;;  %v705_v48 = vld [vmem:[#allocation4 + $0x18] sm:$0xff]   ;;  %v706_v49 = vld [vmem:[#allocation4 + $0x50] sm:$0xff]  }
  0x2c   :  { %338 = vmatprep.subr.bf16.mxu1 %v660_v15  ;;  %v707_v50 = vld [vmem:[#allocation4 + $0x10] sm:$0xff]   ;;  %v51_v54 = vld [vmem:[%s823_s4] sm:$0x3]  ;;  %v708_v4 = vld [vmem:[#allocation4 + $0x48] sm:$0xff]  }
  0x2d   :  { %v59_v56 = vrot.slane %v51_v54, %v58_v53  ;;  %v63_v57 = vrot.slane %v51_v54, %v62_v55  ;;  %v709_v5 = vld [vmem:[#allocation4 + $0x8] sm:$0xff]   ;;  %v710_v6 = vld [vmem:[#allocation4 + $0x40] sm:$0xff]  }
  0x2e   :  { %620 = vmatpush3.bf16.msra.mxu0 %v699_v42  ;;  %v711_v7 = vld [vmem:[#allocation4] sm:$0xff]  }
  0x2f   :  { %339 = vmatpush1.bf16.msra.mxu1 %v662_v16  ;;  %621 = vmatprep.subr.bf16.mxu0 %v700_v43  ;;  %v52_v8 = vld [vmem:[%s823_s4 + $0x2] sm:$0x3] }
  0x30   :  { %340 = vmatprep.subr.bf16.mxu1 %v663_v17  ;;  %v163_v9 = vrot.slane %v52_v8, %v58_v53  ;;  %v167_v10 = vrot.slane %v52_v8, %v62_v55 }
  0x32   :  { %622 = vmatpush3.bf16.msra.mxu0 %v701_v44 }
  0x33   :  { %341 = vmatpush1.bf16.msra.mxu1 %v665_v18  ;;  %623 = vmatprep.subr.bf16.mxu0 %v702_v45 }
  0x34   :  { %342 = vmatprep.subr.bf16.mxu1 %v666_v19 }
  0x36   :  { %624 = vmatpush3.bf16.msra.mxu0 %v703_v46 }
  0x37   :  { %343 = vmatpush1.bf16.msra.mxu1 %v668_v20  ;;  %625 = vmatprep.subr.bf16.mxu0 %v704_v47 }
  0x38   :  { %344 = vmatprep.subr.bf16.mxu1 %v669_v21 }
  0x3a   :  { %626 = vmatpush3.bf16.msra.mxu0 %v705_v48 }
  0x3b   :  { %345 = vmatpush1.bf16.msra.mxu1 %v671_v22  ;;  %627 = vmatprep.subr.bf16.mxu0 %v706_v49  ;;  %v600_v22 = vld [vmem:[%s823_s4 + $0x4] ss:$0 sm:$0xff] }
  0x3c   :  { %346 = vmatprep.subr.bf16.mxu1 %v672_v23 }
  0x3e   :  { %628 = vmatpush3.bf16.msra.mxu0 %v707_v50 }
  0x3f   :  { %347 = vmatpush2.bf16.msra.mxu1 %v674_v24  ;;  %629 = vmatprep.subr.bf16.mxu0 %v708_v4 }
  0x40   :  { %348 = vmatprep.subr.bf16.mxu1 %v675_v25 }
  0x42   :  { %630 = vmatpush3.bf16.msra.mxu0 %v709_v5 }
  0x43   :  { %349 = vmatpush2.bf16.msra.mxu1 %v677_v26  ;;  %631 = vmatprep.subr.bf16.mxu0 %v710_v6 }
  0x44   :  { %350 = vmatprep.subr.bf16.mxu1 %v678_v27 }
  0x46   :  { %632 = vmatpush3.bf16.msra.mxu0 %v711_v7 }
  0x47   :  { %351 = vmatpush2.bf16.msra.mxu1 %v680_v28 }
  0x48   :  { %352 = vmatprep.subr.bf16.mxu1 %v681_v29 }
  0x4b   :  { %353 = vmatpush2.bf16.msra.mxu1 %v683_v30 }
  0x4c   :  { %354 = vmatprep.subr.bf16.mxu1 %v684_v31  ;;  %v554_v31 = vand.u32 127, %v56_v51 }
  0x4e   :  { %vm555_vm2 = vcmp.lt.s32.totalorder %v554_v31, 4 }
  0x4f   :  { %355 = vmatpush2.bf16.msra.mxu1 %v686_v32 }
  0x50   :  { %356 = vmatprep.subr.bf16.mxu1 %v687_v33 }
  0x53   :  { %357 = vmatpush2.bf16.msra.mxu1 %v689_v34 }
  0x54   :  { %358 = vmatprep.subr.bf16.mxu1 %v690_v35 }
  0x57   :  { %359 = vmatpush2.bf16.msra.mxu1 %v692_v36 }
  0x58   :  { %360 = vmatprep.subr.bf16.mxu1 %v693_v37 }
  0x5b   :  { %361 = vmatpush2.bf16.msra.mxu1 %v695_v38 }
  0xe3   :  { %v116_v58 = vpop.f32.mrf.mxu0 }
  0xe4   :  { %v117_v59 = vadd.f32 %v116_v58, %v59_v56 }
  0xe5   :  { %v118_v60 = vpop.f32.mrf.mxu0 }
  0xe6   :  { %v119_v61 = vadd.f32 %v118_v60, %v63_v57  ;;  %v123_v62 = vmax.f32 %v117_v59, 0.0 }
  0xe7   :  { %v120_v63 = vpop.f32.mrf.mxu0 }
  0xe8   :  { %v124_v0 = vmax.f32 %v119_v61, 0.0  ;;  %v125_v3 = vpack.c.bf16 %v123_v62, %v123_v62 }
  0xe9   :  { %v121_v1 = vpop.f32.mrf.mxu0 }
  0xea   :  { %v126_v2 = vpack.c.bf16 %v124_v0, %v124_v0 }
  0xec   :  { %362 = vmatprep.mubr.bf16.mxu1 %v126_v2 }
  0xed   :  { %363 = vmatmul.mubr.bf16.vlgmr.msra.gmra.mxu1 %v125_v3 }
 0x1ad   :  { %v364_v11 = vpop.f32.mrf.mxu1 }
 0x1ae   :  { %v365_v12 = vadd.f32 %v364_v11, %v163_v9 }
 0x1af   :  { %v366_v13 = vpop.f32.mrf.mxu1 }
 0x1b0   :  { %v367_v14 = vadd.f32 %v366_v13, %v167_v10  ;;  %v371_v15 = vmax.f32 %v365_v12, 0.0 }
 0x1b1   :  { %v368_v16 = vpop.f32.mrf.mxu1 }
 0x1b2   :  { %v372_v17 = vmax.f32 %v367_v14, 0.0  ;;  %v373_v20 = vpack.c.bf16 %v371_v15, %v371_v15 }
 0x1b3   :  { %v369_v18 = vpop.f32.mrf.mxu1 }
 0x1b4   :  { %v374_v19 = vpack.c.bf16 %v372_v17, %v372_v17 }
 0x1b6   :  { %541 = vmatprep.mubr.bf16.mxu0 %v374_v19 }
 0x1b7   :  { %542 = vmatmul.mubr.bf16.vlgmr.msra.gmra.mxu0 %v373_v20 }
 0x277   :  { %v633_v21 = vpop.f32.mrf.mxu0 }
 0x279   :  { %v634_v23 = vpop.f32.mrf.mxu0 }
 0x27a   :  { %v635_v24 = vadd.f32 %v634_v23, %v633_v21 }
 0x27b   :  { %v636_v25 = vpop.f32.mrf.mxu0 }
 0x27c   :  { %v544_v26 = vadd.f32 %v635_v24, %v600_v22 }
 0x27d   :  { %v637_v27 = vpop.f32.mrf.mxu0 }
 0x27e   :  { %v549_v28 = vmax.f32 %v544_v26, -20.0 }
 0x280   :  { %v550_v29 = vmin.f32 %v549_v28, 2.0 }
 0x282   :  { %v551_v30 = vmul.f32 1.442695, %v550_v29 }
 0x284   :  { %712 = vpow2.f32 %v551_v30 }
 0x291   :  { %v713_v32 = vpop.eup %712 }
 0x292   :  { %v556_v33 = vsel %vm555_vm2, %v544_v26, %v713_v32 }
 0x293   :  { %557 = vst [vmem:[%s824_s5] sm:$0xff] %v556_v33 }
 0x294   :  { %562 = vsyncpa [#allocation3], 1 }
 0x295   :  { %563 = vsyncpa [#allocation5], 1 }

</bundles_post_ra>
